<compile_context>
chip_gen: v6e
topology: v6e:2x2x1
jax: 0.10.0
libtpu: 0.0.40
codegen_flags: <defaults>
</compile_context>

<pallas_src>
import functools

import jax
import jax.numpy as jnp
from jax.experimental import pallas as pl
from jax.experimental.pallas import tpu as pltpu


def _ntn_decoder_kernel(e1_ref, e2_ref, wbil_ref, selv_ref, vb_ref,
                        wm_ref, bm_ref, out_ref, *, apply_softmax):
    """Fused NTN decoder for one batch tile.

    e1_ref/e2_ref : (TB, D)        node-pair embeddings
    wbil_ref      : (D, K*D)       bilinear weight packed as Wr[i, k*D+j] = W[k,i,j]
    selv_ref      : (K*D + 2D, K)  [block-sum selection matrix ; V_b^T] stacked
    vb_ref        : (1, K)         V_b bias
    wm_ref        : (K, C)         MLP weight, transposed
    bm_ref        : (1, C)         MLP bias
    out_ref       : (TB, C)
    """
    e1 = e1_ref[...]
    e2 = e2_ref[...]
    k_out = selv_ref.shape[1]

    # --- Bilinear left product: one lane-dense MXU matmul (TB, D) @ (D, K*D) ---
    # t[b, k*D + j] = sum_i e1[b, i] * W[k, i, j]
    t = jnp.dot(e1, wbil_ref[...], preferred_element_type=jnp.float32)

    # Replicate e2 along lanes so column k*D + j holds e2[b, j].
    e2_rep = jnp.concatenate([e2] * k_out, axis=1)            # (TB, K*D)

    # --- Fused bilinear reduction + V_b(cat(e1, e2)) in ONE MXU matmul ---
    # q   = [ t * e2_rep | e1 | e2 ]                (TB, K*D + 2D)
    # W'  = [ sel ; V_b^T ]                         (K*D + 2D, K)
    # pre = q @ W' + b_v  == tmp1 + tmp2            (TB, K)
    q = jnp.concatenate([t * e2_rep, e1, e2], axis=1)
    pre = jnp.dot(q, selv_ref[...],
                  preferred_element_type=jnp.float32) + vb_ref[...]

    # --- NeuralTensorLayer activation ---
    h = jnp.tanh(pre)                                          # (TB, K)

    # --- MLP head ---
    out = jnp.dot(h, wm_ref[...], preferred_element_type=jnp.float32) + bm_ref[...]

    if apply_softmax:
        out = out - jnp.max(out, axis=-1, keepdims=True)
        e = jnp.exp(out)
        out = e * pl.reciprocal(jnp.sum(e, axis=-1, keepdims=True), approx=False)

    out_ref[...] = out


def ntn_decoder_forward(e1, e2, params, *, output_activation=None, tb=None):
    """Fused NTN_Decoder forward.

    e1, e2 : (B, D) float32
    params : dict with
        w_bilinear : (K, D, D)   nn.Bilinear weight (bias=False)
        v_weight   : (K, 2D)     nn.Linear(2D, K) weight
        v_bias     : (K,)        nn.Linear(2D, K) bias
        mlp_weight : (C, K)      nn.Linear(K, C) weight
        mlp_bias   : (C,)        nn.Linear(K, C) bias
    """
    B, D = e1.shape
    W = params["w_bilinear"]
    K = W.shape[0]
    Vw, Vb = params["v_weight"], params["v_bias"]
    Mw, Mb = params["mlp_weight"], params["mlp_bias"]
    C = Mw.shape[0]

    # Pack / transpose weights once on the wrapper side.
    w_packed = jnp.transpose(W, (1, 0, 2)).reshape(D, K * D)      # (D, K*D)
    sel = (jnp.arange(K * D)[:, None] // D ==
           jnp.arange(K)[None, :]).astype(jnp.float32)            # (K*D, K)
    selv = jnp.concatenate([sel, Vw.T], axis=0)                    # (K*D + 2D, K)
    vb = Vb.reshape(1, K)
    mw_t = Mw.T                                                    # (K, C)
    mb = Mb.reshape(1, C)

    if tb is None:
        tb = B if B <= 256 else 256
    assert B % tb == 0, "batch must be divisible by the batch tile"
    grid = (B // tb,)

    kernel = functools.partial(_ntn_decoder_kernel,
                               apply_softmax=output_activation is not None)

    return pl.pallas_call(
        kernel,
        out_shape=jax.ShapeDtypeStruct((B, C), jnp.float32),
        grid=grid,
        in_specs=[
            pl.BlockSpec((tb, D), lambda i: (i, 0)),            # embedding1 tile
            pl.BlockSpec((tb, D), lambda i: (i, 0)),            # embedding2 tile
            pl.BlockSpec((D, K * D), lambda i: (0, 0)),         # packed bilinear W
            pl.BlockSpec((K * D + 2 * D, K), lambda i: (0, 0)),  # [sel ; V^T] stacked
            pl.BlockSpec((1, K), lambda i: (0, 0)),             # V_b bias
            pl.BlockSpec((K, C), lambda i: (0, 0)),             # MLP weight^T
            pl.BlockSpec((1, C), lambda i: (0, 0)),             # MLP bias
        ],
        out_specs=pl.BlockSpec((tb, C), lambda i: (i, 0)),
        compiler_params=pltpu.CompilerParams(
            dimension_semantics=("parallel",),                  # batch tiles independent
        ),
    )(e1, e2, w_packed, selv, vb, mw_t, mb)


def _ref_forward(e1, e2, params, output_activation=None):
    """Pure-JAX reference mirroring the PyTorch module."""
    W = params["w_bilinear"]
    Vw, Vb = params["v_weight"], params["v_bias"]
    Mw, Mb = params["mlp_weight"], params["mlp_bias"]
    tmp1 = jnp.einsum("bi,kij,bj->bk", e1, W, e2)
    tmp2 = jnp.concatenate([e1, e2], axis=1) @ Vw.T + Vb
    h = jnp.tanh(tmp1 + tmp2)
    out = h @ Mw.T + Mb
    if output_activation is not None:
        out = jax.nn.softmax(out, axis=1)
    return out


def make_params(key, input_dim, class_num, ntn_out=4):
    k1, k2, k3, k4, k5 = jax.random.split(key, 5)
    return dict(
        w_bilinear=jax.random.normal(k1, (ntn_out, input_dim, input_dim),
                                     jnp.float32) / jnp.sqrt(input_dim),
        v_weight=jax.random.normal(k2, (ntn_out, 2 * input_dim),
                                   jnp.float32) / jnp.sqrt(2.0 * input_dim),
        v_bias=jax.random.normal(k3, (ntn_out,), jnp.float32) * 0.1,
        mlp_weight=jax.random.normal(k4, (class_num, ntn_out),
                                     jnp.float32) / jnp.sqrt(ntn_out),
        mlp_bias=jax.random.normal(k5, (class_num,), jnp.float32) * 0.1,
    )


if __name__ == "__main__":
    B = 128          # number of node pairs (batch)
    INPUT_DIM = 32   # embedding dimension
    CLASS_NUM = 3    # link classes
    # NTN output_dim is fixed to 4 in the module.

    key = jax.random.PRNGKey(0)
    k_e1, k_e2, k_par = jax.random.split(key, 3)

    embedding1 = jax.random.normal(k_e1, (B, INPUT_DIM), jnp.float32)
    embedding2 = jax.random.normal(k_e2, (B, INPUT_DIM), jnp.float32)
    params = make_params(k_par, INPUT_DIM, CLASS_NUM)

    # output_activation=None path (module default): raw MLP logits.
    out = ntn_decoder_forward(embedding1, embedding2, params)
    out = jax.block_until_ready(out)
    ref = _ref_forward(embedding1, embedding2, params)
    assert out.shape == (B, CLASS_NUM)
    assert jnp.max(jnp.abs(out - ref)) < 2e-4, "logits mismatch vs reference"

    # output_activation set -> softmax over classes.
    out_sm = ntn_decoder_forward(embedding1, embedding2, params,
                                 output_activation="softmax")
    out_sm = jax.block_until_ready(out_sm)
    ref_sm = _ref_forward(embedding1, embedding2, params,
                          output_activation="softmax")
    assert jnp.max(jnp.abs(out_sm - ref_sm)) < 2e-4, "softmax mismatch vs reference"

    print("KERNEL_OK")
</pallas_src>

<mosaic_0001>
module attributes {stable_mosaic.version = 11 : i64} {
  func.func @_ntn_decoder_kernel(%arg0: i32, %arg1: memref<128x32xf32, #tpu.memory_space<vmem>>, %arg2: memref<128x32xf32, #tpu.memory_space<vmem>>, %arg3: memref<32x128xf32, #tpu.memory_space<vmem>>, %arg4: memref<192x4xf32, #tpu.memory_space<vmem>>, %arg5: memref<1x4xf32, #tpu.memory_space<vmem>>, %arg6: memref<4x3xf32, #tpu.memory_space<vmem>>, %arg7: memref<1x3xf32, #tpu.memory_space<vmem>>, %arg8: memref<128x3xf32, #tpu.memory_space<vmem>>) attributes {dimension_semantics = [#tpu.dimension_semantics<parallel>], iteration_bounds = array<i64: 1>, scalar_prefetch = 0 : i64, scratch_operands = 0 : i64, tpu.core_type = #tpu.core_type<tc>, window_params = [{transform_indices = @transform_0, window_bounds = array<i64: 128, 32>}, {transform_indices = @transform_1, window_bounds = array<i64: 128, 32>}, {pipeline_mode = #tpu.pipeline_mode<synchronous>, transform_indices = @transform_2, window_bounds = array<i64: 32, 128>}, {pipeline_mode = #tpu.pipeline_mode<synchronous>, transform_indices = @transform_3, window_bounds = array<i64: 192, 4>}, {pipeline_mode = #tpu.pipeline_mode<synchronous>, transform_indices = @transform_4, window_bounds = array<i64: 1, 4>}, {pipeline_mode = #tpu.pipeline_mode<synchronous>, transform_indices = @transform_5, window_bounds = array<i64: 4, 3>}, {pipeline_mode = #tpu.pipeline_mode<synchronous>, transform_indices = @transform_6, window_bounds = array<i64: 1, 3>}, {transform_indices = @transform_7, window_bounds = array<i64: 128, 3>}]} {
    %c0 = arith.constant 0 : index
    %c0_0 = arith.constant 0 : index
    %0 = vector.load %arg1[%c0, %c0_0] : memref<128x32xf32, #tpu.memory_space<vmem>>, vector<128x32xf32>
    %c0_1 = arith.constant 0 : index
    %c0_2 = arith.constant 0 : index
    %1 = vector.load %arg2[%c0_1, %c0_2] : memref<128x32xf32, #tpu.memory_space<vmem>>, vector<128x32xf32>
    %c0_3 = arith.constant 0 : index
    %c0_4 = arith.constant 0 : index
    %2 = vector.load %arg3[%c0_3, %c0_4] : memref<32x128xf32, #tpu.memory_space<vmem>>, vector<32x128xf32>
    %cst = arith.constant dense<0.000000e+00> : vector<128x128xf32>
    %3 = tpu.matmul %0, %2, %cst {dimension_numbers = #tpu.dot_dimension_numbers<[1], [0], [0], [1], [0, 0, 1, 1], [], []>} : vector<128x32xf32>, vector<32x128xf32>, vector<128x128xf32> -> vector<128x128xf32>
    %4 = tpu.concatenate %1, %1, %1, %1 in 1 : vector<128x32xf32>, vector<128x32xf32>, vector<128x32xf32>, vector<128x32xf32> -> vector<128x128xf32>
    %5 = arith.mulf %3, %4 : vector<128x128xf32>
    %6 = tpu.concatenate %5, %0, %1 in 1 : vector<128x128xf32>, vector<128x32xf32>, vector<128x32xf32> -> vector<128x192xf32>
    %c0_5 = arith.constant 0 : index
    %c0_6 = arith.constant 0 : index
    %7 = vector.load %arg4[%c0_5, %c0_6] : memref<192x4xf32, #tpu.memory_space<vmem>>, vector<192x4xf32>
    %cst_7 = arith.constant dense<0.000000e+00> : vector<128x4xf32>
    %8 = tpu.matmul %6, %7, %cst_7 {dimension_numbers = #tpu.dot_dimension_numbers<[1], [0], [0], [1], [0, 0, 1, 1], [], []>} : vector<128x192xf32>, vector<192x4xf32>, vector<128x4xf32> -> vector<128x4xf32>
    %c0_8 = arith.constant 0 : index
    %c0_9 = arith.constant 0 : index
    %9 = vector.load %arg5[%c0_8, %c0_9] : memref<1x4xf32, #tpu.memory_space<vmem>>, vector<1x4xf32>
    %10 = vector.broadcast %9 : vector<1x4xf32> to vector<128x4xf32>
    %11 = arith.addf %8, %10 : vector<128x4xf32>
    %12 = math.tanh %11 : vector<128x4xf32>
    %c0_10 = arith.constant 0 : index
    %c0_11 = arith.constant 0 : index
    %13 = vector.load %arg6[%c0_10, %c0_11] : memref<4x3xf32, #tpu.memory_space<vmem>>, vector<4x3xf32>
    %cst_12 = arith.constant dense<0.000000e+00> : vector<128x3xf32>
    %14 = tpu.matmul %12, %13, %cst_12 {dimension_numbers = #tpu.dot_dimension_numbers<[1], [0], [0], [1], [0, 0, 1, 1], [], []>} : vector<128x4xf32>, vector<4x3xf32>, vector<128x3xf32> -> vector<128x3xf32>
    %c0_13 = arith.constant 0 : index
    %c0_14 = arith.constant 0 : index
    %15 = vector.load %arg7[%c0_13, %c0_14] : memref<1x3xf32, #tpu.memory_space<vmem>>, vector<1x3xf32>
    %16 = vector.broadcast %15 : vector<1x3xf32> to vector<128x3xf32>
    %17 = arith.addf %14, %16 : vector<128x3xf32>
    %c0_15 = arith.constant 0 : index
    %c0_16 = arith.constant 0 : index
    %18 = vector.load %arg8[%c0_15, %c0_16] : memref<128x3xf32, #tpu.memory_space<vmem>>, vector<128x3xf32>
    tpu.vector_store %arg8[%c0_15, %c0_16], %17 {strides = array<i32>} : memref<128x3xf32, #tpu.memory_space<vmem>>, vector<128x3xf32>,
    return
  }
  func.func @transform_0(%arg0: i32) -> (i32, i32) {
    %c0_i32 = arith.constant 0 : i32
    %c0_i32_0 = arith.constant 0 : i32
    return %arg0, %c0_i32 : i32, i32
  }
  func.func @transform_1(%arg0: i32) -> (i32, i32) {
    %c0_i32 = arith.constant 0 : i32
    %c0_i32_0 = arith.constant 0 : i32
    return %arg0, %c0_i32 : i32, i32
  }
  func.func @transform_2(%arg0: i32) -> (i32, i32) {
    %c0_i32 = arith.constant 0 : i32
    %c0_i32_0 = arith.constant 0 : i32
    %c0_i32_1 = arith.constant 0 : i32
    return %c0_i32, %c0_i32_0 : i32, i32
  }
  func.func @transform_3(%arg0: i32) -> (i32, i32) {
    %c0_i32 = arith.constant 0 : i32
    %c0_i32_0 = arith.constant 0 : i32
    %c0_i32_1 = arith.constant 0 : i32
    return %c0_i32, %c0_i32_0 : i32, i32
  }
  func.func @transform_4(%arg0: i32) -> (i32, i32) {
    %c0_i32 = arith.constant 0 : i32
    %c0_i32_0 = arith.constant 0 : i32
    %c0_i32_1 = arith.constant 0 : i32
    return %c0_i32, %c0_i32_0 : i32, i32
  }
  func.func @transform_5(%arg0: i32) -> (i32, i32) {
    %c0_i32 = arith.constant 0 : i32
    %c0_i32_0 = arith.constant 0 : i32
    %c0_i32_1 = arith.constant 0 : i32
    return %c0_i32, %c0_i32_0 : i32, i32
  }
  func.func @transform_6(%arg0: i32) -> (i32, i32) {
    %c0_i32 = arith.constant 0 : i32
    %c0_i32_0 = arith.constant 0 : i32
    %c0_i32_1 = arith.constant 0 : i32
    return %c0_i32, %c0_i32_0 : i32, i32
  }
  func.func @transform_7(%arg0: i32) -> (i32, i32) {
    %c0_i32 = arith.constant 0 : i32
    %c0_i32_0 = arith.constant 0 : i32
    return %arg0, %c0_i32 : i32, i32
  }
}

</mosaic_0001>

<bundles_post_ra>
// kernel: tpu_custom_call.1
= control target key start
LH: loop header
LB: loop body
LE: loop exit
PB: predicated region body
PF: predicated region fallthrough
CT: control target
= control target key end

     0   :  { %vm62_vm0 = vcmask 261120   ;;  %v1195_v2 = vmov 0.0   ;;  %s1196_s15 = smov 32   ;;  %s1198_s20 = smov 64   ;;  %vm432_vm1 = vcmask 523264   ;;  %vm449_vm2 = vcmask 785408   ;;  %s1942_s2 = inlined_call_operand.vmem [shape: f32[32,128], index: 2, kind: input, shape index: {}]   ;;  %s1943_s0 = inlined_call_operand.vmem [shape: f32[128,32], index: 0, kind: input, shape index: {}]   ;;  %s1944_s1 = inlined_call_operand.vmem [shape: f32[128,32], index: 1, kind: input, shape index: {}]   ;;  %s1945_s3 = inlined_call_operand.vmem [shape: f32[192,4], index: 3, kind: input, shape index: {}]   ;;  %s1946_s5 = inlined_call_operand.vmem [shape: f32[4,3], index: 5, kind: input, shape index: {}]   ;;  %s1947_s4 = inlined_call_operand.vmem [shape: f32[1,4], index: 4, kind: input, shape index: {}]   ;;  %s1948_s6 = inlined_call_operand.vmem [shape: f32[1,3], index: 6, kind: input, shape index: {}]   ;;  %s1949_s7 = inlined_call_operand.vmem [shape: f32[128,3], index: 7, kind: output, shape index: {}]  }
   0x1   :  { %v61_v0 = vld [vmem:[%s1942_s2 + $0x18] sm:$0xff]  ;;  %v60_v1 = vld [vmem:[%s1942_s2 + $0x10] sm:$0xff]  ;;  %1111 = vmatprep.subr.mxu1 %v1195_v2  ;;  %v1249_v3 = vld [vmem:[%s1943_s0] sm:$0xff]  ;;  %vm795_vm3 = vcmask 1043456   ;;  %vm746_vm4 = vcmask 31744   ;;  %vm944_vm5 = vcmask 23552  }
   0x2   :  { %1053 = vmatprep.subr.mxu0 %v61_v0  ;;  %v59_v4 = vld [vmem:[%s1942_s2 + $0x8] sm:$0xff]  ;;  %1061 = vmatprep.mubr.msk.f32.mxu0 %vm62_vm0, %v1249_v3  ;;  %v58_v5 = vld [vmem:[%s1942_s2] sm:$0xff]  ;;  %v1262_v6 = vld [vmem:[%s1944_s1 + $0x18] sm:$0xff]  ;;  %s1197_s2 = smov 96  }
   0x3   :  { %1054 = vmatpush3.msra.mxu0 %v61_v0  ;;  %v1267_v7 = vld [vmem:[%s1943_s0 + $0x8] sm:$0xff]  ;;  %278 = vrot.lane.b32.xlu0 %v1262_v6, %s1196_s15  ;;  %v1274_v8 = vld [vmem:[%s1943_s0 + $0x10] sm:$0xff]  ;;  %v1286_v9 = vld [vmem:[%s1943_s0 + $0x18] sm:$0xff] }
   0x4   :  { %1055 = vmatprep.subr.mxu0 %v60_v1  ;;  %374 = vrot.lane.b32.xlu1 %v1262_v6, %s1197_s2  ;;  %v1293_v10 = vld [vmem:[%s1944_s1 + $0x20] sm:$0xff]  ;;  %v513_v12 = vld [vmem:[%s1945_s3 + $0x78] sm:$0xff]  ;;  %v1312_v13 = vld [vmem:[%s1943_s0 + $0x28] sm:$0xff] }
   0x5   :  { %1056 = vmatpush3.msra.mxu0 %v60_v1  ;;  %v1298_v11 = vld [vmem:[%s1943_s0 + $0x20] sm:$0xff]  ;;  %1135 = vmatpush1.msra.mxu1 %v513_v12  ;;  %v1319_v14 = vld [vmem:[%s1943_s0 + $0x30] sm:$0xff]  ;;  %v1324_v15 = vld [vmem:[%s1944_s1 + $0x28] sm:$0xff] }
   0x6   :  { %1057 = vmatprep.subr.mxu0 %v59_v4  ;;  %v512_v16 = vld [vmem:[%s1945_s3 + $0x70] sm:$0xff]  ;;  %1112 = vmatprep.subr.mxu1 %v1195_v2  ;;  %v1340_v17 = vld [vmem:[%s1943_s0 + $0x38] sm:$0xff]  ;;  %v1347_v18 = vld [vmem:[%s1943_s0 + $0x40] sm:$0xff] }
   0x7   :  { %1058 = vmatpush3.msra.mxu0 %v59_v4  ;;  %326 = vrot.lane.b32.xlu0 %v1262_v6, %s1198_s20  ;;  %v511_v19 = vld [vmem:[%s1945_s3 + $0x68] sm:$0xff]  ;;  %v1370_v21 = vld [vmem:[%s1944_s1 + $0x30] sm:$0xff]  ;;  %v510_v23 = vld [vmem:[%s1945_s3 + $0x60] sm:$0xff] }
   0x8   :  { %1059 = vmatprep.subr.mxu0 %v58_v5  ;;  %280 = vrot.lane.b32.xlu1 %v1293_v10, %s1196_s15  ;;  %v1363_v20 = vld [vmem:[%s1943_s0 + $0x48] sm:$0xff]  ;;  %v1375_v22 = vld [vmem:[%s1943_s0 + $0x50] sm:$0xff]  ;;  %v1391_v24 = vld [vmem:[%s1943_s0 + $0x58] sm:$0xff] }
   0x9   :  { %1060 = vmatpush3.msra.mxu0 %v58_v5  ;;  %1136 = vmatpush1.msra.mxu1 %v512_v16  ;;  %v1398_v25 = vld [vmem:[%s1943_s0 + $0x60] sm:$0xff]  ;;  %v1410_v27 = vld [vmem:[%s1944_s1 + $0x38] sm:$0xff]  ;;  %v1424_v29 = vld [vmem:[%s1943_s0 + $0x68] sm:$0xff] }
   0xa   :  { %1062 = vmatmul.mubr.msk.f32.vlgmr.msra.gmra.mxu0 %vm62_vm0, %v1267_v7  ;;  %577 = vmatprep.subr.mxu0 %v1195_v2  ;;  %v1403_v26 = vld [vmem:[%s1944_s1] sm:$0xff]  ;;  %v509_v28 = vld [vmem:[%s1945_s3 + $0x58] sm:$0xff]  ;;  %1954 = vst [vmem:[#allocation2_spill] sm:$0xff] %v1424_v29  ;;  %v1431_v30 = vld [vmem:[%s1943_s0 + $0x70] sm:$0xff] }
   0xb   :  { %1064 = vmatprep.mubr.msk.f32.mxu0 %vm62_vm0, %v1274_v8  ;;  %328 = vrot.lane.b32.xlu0 %v1293_v10, %s1198_s20  ;;  %1955 = vst [vmem:[#allocation3_spill] sm:$0xff] %v1431_v30  ;;  %v508_v31 = vld [vmem:[%s1945_s3 + $0x50] sm:$0xff]  ;;  %v1447_v32 = vld [vmem:[%s1943_s0 + $0x78] sm:$0xff]  ;;  %v507_v33 = vld [vmem:[%s1945_s3 + $0x48] sm:$0xff] }
   0xc   :  { %376 = vrot.lane.b32.xlu1 %v1293_v10, %s1197_s2  ;;  %578 = vmatpush1.msra.mxu0 %v513_v12  ;;  %1956 = vst [vmem:[#allocation4_spill] sm:$0xff] %v1447_v32  ;;  %v506_v34 = vld [vmem:[%s1945_s3 + $0x40] sm:$0xff]  ;;  %v1468_v35 = vld [vmem:[%s1944_s1 + $0x8] sm:$0xff]  ;;  %v505_v36 = vld [vmem:[%s1945_s3 + $0x38] sm:$0xff] }
   0xd   :  { %579 = vmatprep.subr.mxu0 %v1195_v2  ;;  %1113 = vmatprep.subr.mxu1 %v1195_v2  ;;  %v1479_v37 = vld [vmem:[%s1944_s1 + $0x40] sm:$0xff]  ;;  %v504_v38 = vld [vmem:[%s1945_s3 + $0x30] sm:$0xff]  ;;  %v503_v39 = vld [vmem:[%s1945_s3 + $0x28] sm:$0xff] }
   0xe   :  { %1065 = vmatmul.mubr.msk.f32.gmra.mxu0 %vm62_vm0, %v1286_v9  ;;  %1137 = vmatpush1.msra.mxu1 %v511_v19  ;;  %v502_v40 = vld [vmem:[%s1945_s3 + $0x20] sm:$0xff]  ;;  %v501_v41 = vld [vmem:[%s1945_s3 + $0x18] sm:$0xff]  ;;  %v1514_v42 = vld [vmem:[%s1944_s1 + $0x10] sm:$0xff] }
   0xf   :  { %1067 = vmatprep.mubr.msk.f32.mxu0 %vm62_vm0, %v1298_v11  ;;  %282 = vrot.lane.b32.xlu0 %v1324_v15, %s1196_s15  ;;  %v1522_v43 = vld [vmem:[%s1944_s1 + $0x48] sm:$0xff]  ;;  %v500_v44 = vld [vmem:[%s1945_s3 + $0x10] sm:$0xff]  ;;  %v498_v46 = vld [vmem:[%s1945_s3] sm:$0xff] }
  0x10   :  { %330 = vrot.lane.b32.xlu1 %v1324_v15, %s1198_s20  ;;  %580 = vmatpush1.msra.mxu0 %v512_v16  ;;  %v499_v45 = vld [vmem:[%s1945_s3 + $0x8] sm:$0xff]  ;;  %v521_v47 = vld [vmem:[%s1945_s3 + $0xb8] sm:$0xff]  ;;  %v1560_v48 = vld [vmem:[%s1944_s1 + $0x50] sm:$0xff] }
  0x11   :  { %581 = vmatprep.subr.mxu0 %v1195_v2  ;;  %1114 = vmatprep.subr.mxu1 %v1195_v2  ;;  %v520_v49 = vld [vmem:[%s1945_s3 + $0xb0] sm:$0xff]  ;;  %v519_v50 = vld [vmem:[%s1945_s3 + $0xa8] sm:$0xff]  ;;  %v1578_v51 = vld [vmem:[%s1944_s1 + $0x58] sm:$0xff] }
  0x12   :  { %1068 = vmatmul.mubr.msk.f32.gmra.mxu0 %vm62_vm0, %v1312_v13  ;;  %1138 = vmatpush1.msra.mxu1 %v510_v23  ;;  %v518_v52 = vld [vmem:[%s1945_s3 + $0xa0] sm:$0xff]  ;;  %v517_v53 = vld [vmem:[%s1945_s3 + $0x98] sm:$0xff]  ;;  %v516_v54 = vld [vmem:[%s1945_s3 + $0x90] sm:$0xff] }
  0x13   :  { %1070 = vmatprep.mubr.msk.f32.mxu0 %vm62_vm0, %v1319_v14  ;;  %378 = vrot.lane.b32.xlu0 %v1324_v15, %s1197_s2  ;;  %v1605_v55 = vld [vmem:[%s1944_s1 + $0x60] sm:$0xff]  ;;  %v515_v56 = vld [vmem:[%s1945_s3 + $0x88] sm:$0xff]  ;;  %v1640_v59 = vld [vmem:[%s1944_s1 + $0x70] sm:$0xff] }
  0x14   :  { %284 = vrot.lane.b32.xlu1 %v1370_v21, %s1196_s15  ;;  %582 = vmatpush1.msra.mxu0 %v511_v19  ;;  %v514_v57 = vld [vmem:[%s1945_s3 + $0x80] sm:$0xff]  ;;  %v1624_v58 = vld [vmem:[%s1944_s1 + $0x68] sm:$0xff]  ;;  %v1649_v60 = vld [vmem:[%s1944_s1 + $0x78] sm:$0xff] }
  0x15   :  { %583 = vmatprep.subr.mxu0 %v1195_v2  ;;  %1115 = vmatprep.subr.mxu1 %v1195_v2  ;;  %1957 = vst [vmem:[#allocation5_spill] sm:$0xff] %v1649_v60 }
  0x16   :  { %1071 = vmatmul.mubr.msk.f32.gmra.mxu0 %vm62_vm0, %v1340_v17  ;;  %1139 = vmatpush1.msra.mxu1 %v509_v28 }
  0x17   :  { %1073 = vmatprep.mubr.msk.f32.mxu0 %vm62_vm0, %v1347_v18  ;;  %332 = vrot.lane.b32.xlu0 %v1370_v21, %s1198_s20 }
  0x18   :  { %380 = vrot.lane.b32.xlu1 %v1370_v21, %s1197_s2  ;;  %584 = vmatpush1.msra.mxu0 %v510_v23 }
  0x19   :  { %585 = vmatprep.subr.mxu0 %v1195_v2  ;;  %1116 = vmatprep.subr.mxu1 %v1195_v2 }
  0x1a   :  { %1074 = vmatmul.mubr.msk.f32.gmra.mxu0 %vm62_vm0, %v1363_v20  ;;  %1140 = vmatpush1.msra.mxu1 %v508_v31 }
  0x1b   :  { %1076 = vmatprep.mubr.msk.f32.mxu0 %vm62_vm0, %v1375_v22  ;;  %272 = vrot.lane.b32.xlu0 %v1403_v26, %s1196_s15 }
  0x1c   :  { %286 = vrot.lane.b32.xlu1 %v1410_v27, %s1196_s15  ;;  %586 = vmatpush1.msra.mxu0 %v509_v28 }
  0x1d   :  { %587 = vmatprep.subr.mxu0 %v1195_v2  ;;  %1117 = vmatprep.subr.mxu1 %v1195_v2 }
  0x1e   :  { %1077 = vmatmul.mubr.msk.f32.gmra.mxu0 %vm62_vm0, %v1391_v24  ;;  %1141 = vmatpush1.msra.mxu1 %v507_v33 }
  0x1f   :  { %1079 = vmatprep.mubr.msk.f32.mxu0 %vm62_vm0, %v1398_v25  ;;  %320 = vrot.lane.b32.xlu0 %v1403_v26, %s1198_s20 }
  0x20   :  { %334 = vrot.lane.b32.xlu1 %v1410_v27, %s1198_s20  ;;  %588 = vmatpush1.msra.mxu0 %v508_v31 }
  0x21   :  { %589 = vmatprep.subr.mxu0 %v1195_v2  ;;  %1118 = vmatprep.subr.mxu1 %v1195_v2 }
  0x22   :  { %1080 = vmatmul.mubr.msk.f32.gmra.mxu0 %vm62_vm0, %v1424_v29  ;;  %1142 = vmatpush1.msra.mxu1 %v506_v34 }
  0x23   :  { %1082 = vmatprep.mubr.msk.f32.mxu0 %vm62_vm0, %v1431_v30  ;;  %368 = vrot.lane.b32.xlu0 %v1403_v26, %s1197_s2 }
  0x24   :  { %590 = vmatpush1.msra.mxu0 %v507_v33  ;;  %382 = vrot.lane.b32.xlu1 %v1410_v27, %s1197_s2 }
  0x25   :  { %591 = vmatprep.subr.mxu0 %v1195_v2  ;;  %1119 = vmatprep.subr.mxu1 %v1195_v2 }
  0x26   :  { %1083 = vmatmul.mubr.msk.f32.gmra.mxu0 %vm62_vm0, %v1447_v32  ;;  %1143 = vmatpush1.msra.mxu1 %v505_v36 }
  0x27   :  { %592 = vmatpush1.msra.mxu0 %v506_v34  ;;  %274 = vrot.lane.b32.xlu0 %v1468_v35, %s1196_s15 }
  0x28   :  { %593 = vmatprep.subr.mxu0 %v1195_v2  ;;  %288 = vrot.lane.b32.xlu1 %v1479_v37, %s1196_s15 }
  0x29   :  { %594 = vmatpush1.msra.mxu0 %v505_v36  ;;  %1120 = vmatprep.subr.mxu1 %v1195_v2 }
  0x2a   :  { %595 = vmatprep.subr.mxu0 %v1195_v2  ;;  %1144 = vmatpush1.msra.mxu1 %v504_v38 }
  0x2b   :  { %596 = vmatpush1.msra.mxu0 %v504_v38  ;;  %322 = vrot.lane.b32.xlu0 %v1468_v35, %s1198_s20 }
  0x2c   :  { %597 = vmatprep.subr.mxu0 %v1195_v2  ;;  %336 = vrot.lane.b32.xlu1 %v1479_v37, %s1198_s20 }
  0x2d   :  { %598 = vmatpush1.msra.mxu0 %v503_v39  ;;  %1121 = vmatprep.subr.mxu1 %v1195_v2 }
  0x2e   :  { %599 = vmatprep.subr.mxu0 %v1195_v2  ;;  %1145 = vmatpush1.msra.mxu1 %v503_v39 }
  0x2f   :  { %370 = vrot.lane.b32.xlu0 %v1468_v35, %s1197_s2  ;;  %600 = vmatpush1.msra.mxu0 %v502_v40 }
  0x30   :  { %384 = vrot.lane.b32.xlu1 %v1479_v37, %s1197_s2  ;;  %1122 = vmatprep.subr.mxu1 %v1195_v2 }
  0x31   :  { %601 = vmatprep.subr.mxu0 %v1195_v2  ;;  %1146 = vmatpush1.msra.mxu1 %v502_v40 }
  0x32   :  { %602 = vmatpush1.msra.mxu0 %v501_v41  ;;  %1123 = vmatprep.subr.mxu1 %v1195_v2 }
  0x33   :  { %276 = vrot.lane.b32.xlu0 %v1514_v42, %s1196_s15  ;;  %603 = vmatprep.subr.mxu0 %v1195_v2 }
  0x34   :  { %290 = vrot.lane.b32.xlu1 %v1522_v43, %s1196_s15  ;;  %1147 = vmatpush1.msra.mxu1 %v501_v41 }
  0x35   :  { %604 = vmatpush1.msra.mxu0 %v500_v44  ;;  %1124 = vmatprep.subr.mxu1 %v1195_v2 }
  0x36   :  { %605 = vmatprep.subr.mxu0 %v1195_v2  ;;  %1148 = vmatpush1.msra.mxu1 %v500_v44 }
  0x37   :  { %324 = vrot.lane.b32.xlu0 %v1514_v42, %s1198_s20  ;;  %606 = vmatpush1.msra.mxu0 %v499_v45 }
  0x38   :  { %338 = vrot.lane.b32.xlu1 %v1522_v43, %s1198_s20  ;;  %1125 = vmatprep.subr.mxu1 %v1195_v2 }
  0x39   :  { %607 = vmatprep.subr.mxu0 %v1195_v2  ;;  %1149 = vmatpush1.msra.mxu1 %v499_v45 }
  0x3a   :  { %608 = vmatpush1.msra.mxu0 %v498_v46  ;;  %1126 = vmatprep.subr.mxu1 %v1195_v2 }
  0x3b   :  { %372 = vrot.lane.b32.xlu0 %v1514_v42, %s1197_s2  ;;  %625 = vmatprep.subr.mxu0 %v1195_v2 }
  0x3c   :  { %386 = vrot.lane.b32.xlu1 %v1522_v43, %s1197_s2  ;;  %1150 = vmatpush1.msra.mxu1 %v498_v46 }
  0x3d   :  { %626 = vmatpush2.msra.mxu0 %v521_v47  ;;  %1127 = vmatprep.subr.mxu1 %v1195_v2 }
  0x3e   :  { %627 = vmatprep.subr.mxu0 %v1195_v2  ;;  %1151 = vmatpush2.msra.mxu1 %v521_v47 }
  0x3f   :  { %292 = vrot.lane.b32.xlu0 %v1560_v48, %s1196_s15  ;;  %628 = vmatpush2.msra.mxu0 %v520_v49 }
  0x40   :  { %340 = vrot.lane.b32.xlu1 %v1560_v48, %s1198_s20  ;;  %1128 = vmatprep.subr.mxu1 %v1195_v2 }
  0x41   :  { %629 = vmatprep.subr.mxu0 %v1195_v2  ;;  %1152 = vmatpush2.msra.mxu1 %v520_v49 }
  0x42   :  { %630 = vmatpush2.msra.mxu0 %v519_v50  ;;  %1129 = vmatprep.subr.mxu1 %v1195_v2 }
  0x43   :  { %388 = vrot.lane.b32.xlu0 %v1560_v48, %s1197_s2  ;;  %631 = vmatprep.subr.mxu0 %v1195_v2 }
  0x44   :  { %294 = vrot.lane.b32.xlu1 %v1578_v51, %s1196_s15  ;;  %1153 = vmatpush2.msra.mxu1 %v519_v50 }
  0x45   :  { %632 = vmatpush2.msra.mxu0 %v518_v52  ;;  %1130 = vmatprep.subr.mxu1 %v1195_v2 }
  0x46   :  { %633 = vmatprep.subr.mxu0 %v1195_v2  ;;  %1154 = vmatpush2.msra.mxu1 %v518_v52 }
  0x47   :  { %342 = vrot.lane.b32.xlu0 %v1578_v51, %s1198_s20  ;;  %634 = vmatpush2.msra.mxu0 %v517_v53 }
  0x48   :  { %390 = vrot.lane.b32.xlu1 %v1578_v51, %s1197_s2  ;;  %1131 = vmatprep.subr.mxu1 %v1195_v2 }
  0x49   :  { %635 = vmatprep.subr.mxu0 %v1195_v2  ;;  %1155 = vmatpush2.msra.mxu1 %v517_v53 }
  0x4a   :  { %636 = vmatpush2.msra.mxu0 %v516_v54  ;;  %1132 = vmatprep.subr.mxu1 %v1195_v2 }
  0x4b   :  { %296 = vrot.lane.b32.xlu0 %v1605_v55, %s1196_s15  ;;  %637 = vmatprep.subr.mxu0 %v1195_v2 }
  0x4c   :  { %344 = vrot.lane.b32.xlu1 %v1605_v55, %s1198_s20  ;;  %1156 = vmatpush2.msra.mxu1 %v516_v54 }
  0x4d   :  { %638 = vmatpush2.msra.mxu0 %v515_v56  ;;  %1133 = vmatprep.subr.mxu1 %v1195_v2 }
  0x4e   :  { %639 = vmatprep.subr.mxu0 %v1195_v2  ;;  %1157 = vmatpush2.msra.mxu1 %v515_v56 }
  0x4f   :  { %392 = vrot.lane.b32.xlu0 %v1605_v55, %s1197_s2  ;;  %640 = vmatpush2.msra.mxu0 %v514_v57 }
  0x50   :  { %298 = vrot.lane.b32.xlu1 %v1624_v58, %s1196_s15  ;;  %1134 = vmatprep.subr.mxu1 %v1195_v2 }
  0x51   :  { %1158 = vmatpush2.msra.mxu1 %v514_v57 }
  0x53   :  { %346 = vrot.lane.b32.xlu0 %v1624_v58, %s1198_s20 }
  0x54   :  { %394 = vrot.lane.b32.xlu1 %v1624_v58, %s1197_s2 }
  0x57   :  { %300 = vrot.lane.b32.xlu0 %v1640_v59, %s1196_s15 }
  0x58   :  { %348 = vrot.lane.b32.xlu1 %v1640_v59, %s1198_s20 }
  0x5b   :  { %396 = vrot.lane.b32.xlu0 %v1640_v59, %s1197_s2 }
  0x5c   :  { %302 = vrot.lane.b32.xlu1 %v1649_v60, %s1196_s15 }
  0x5f   :  { %350 = vrot.lane.b32.xlu0 %v1649_v60, %s1198_s20 }
  0x60   :  { %398 = vrot.lane.b32.xlu1 %v1649_v60, %s1197_s2 }
  0x75   :  { %v279_v61 = vpop.permute.xlu0 %278 }
  0x76   :  { %v375_v62 = vpop.permute.xlu1 %374  ;;  %v485_v63 = vsel %vm62_vm0, %v1286_v9, %v279_v61  ;;  %v419_v0 = vsel %vm62_vm0, %v1262_v6, %v279_v61 }
  0x77   :  { %985 = vmatprep.mubr.msk.f32.mxu1 %vm432_vm1, %v485_v63 }
  0x79   :  { %v327_v1 = vpop.permute.xlu0 %326 }
  0x7a   :  { %v436_v2 = vsel %vm432_vm1, %v419_v0, %v327_v1  ;;  %v281_v4 = vpop.permute.xlu1 %280 }
  0x7d   :  { %v329_v5 = vpop.permute.xlu0 %328 }
  0x7e   :  { %v1665_v12 = vpop.permute.xlu1 %376 }
  0x81   :  { %v1667_v16 = vpop.permute.xlu0 %282 }
  0x82   :  { %v421_v19 = vsel %vm62_vm0, %v1324_v15, %v1667_v16  ;;  %v331_v23 = vpop.permute.xlu1 %330 }
  0x83   :  { %v438_v9 = vsel %vm432_vm1, %v421_v19, %v331_v23 }
  0x85   :  { %v379_v28 = vpop.permute.xlu0 %378 }
  0x86   :  { %v1673_v6 = vpop.permute.xlu1 %284  ;;  %v1676_v31 = vsel %vm449_vm2, %v438_v9, %v379_v28 }
  0x89   :  { %v1678_v33 = vpop.permute.xlu0 %332 }
  0x8a   :  { %v1680_v34 = vpop.permute.xlu1 %380 }
  0x8d   :  { %v273_v36 = vpop.permute.xlu0 %272 }
  0x8e   :  { %v482_v38 = vsel %vm62_vm0, %v1249_v3, %v273_v36  ;;  %v1685_v15 = vpop.permute.xlu1 %286  ;;  %v416_v63 = vsel %vm62_vm0, %v1403_v26, %v273_v36  ;;  %v420_v26 = vsel %vm62_vm0, %v1293_v10, %v281_v4  ;;  %v486_v10 = vsel %vm62_vm0, %v1298_v11, %v281_v4 }
  0x8f   :  { %982 = vmatprep.mubr.msk.f32.mxu0 %vm432_vm1, %v482_v38 }
  0x91   :  { %v321_v39 = vpop.permute.xlu0 %320 }
  0x92   :  { %v1687_v40 = vpop.permute.xlu1 %334  ;;  %v433_v19 = vsel %vm432_vm1, %v416_v63, %v321_v39  ;;  %v453_v39 = vsel %vm449_vm2, %v436_v2, %v375_v62  ;;  %v437_v62 = vsel %vm432_vm1, %v420_v26, %v329_v5  ;;  %v422_v5 = vsel %vm62_vm0, %v1370_v21, %v1673_v6 }
  0x95   :  { %v369_v41 = vpop.permute.xlu0 %368 }
  0x96   :  { %v1689_v44 = vpop.permute.xlu1 %382  ;;  %v450_v30 = vsel %vm449_vm2, %v433_v19, %v369_v41 }
  0x99   :  { %v275_v45 = vpop.permute.xlu0 %274 }
  0x9a   :  { %v1691_v46 = vpop.permute.xlu1 %288  ;;  %v417_v0 = vsel %vm62_vm0, %v1468_v35, %v275_v45 }
  0x9d   :  { %v323_v47 = vpop.permute.xlu0 %322 }
  0x9e   :  { %v1693_v49 = vpop.permute.xlu1 %336  ;;  %v434_v9 = vsel %vm432_vm1, %v417_v0, %v323_v47  ;;  %v483_v47 = vsel %vm62_vm0, %v1267_v7, %v275_v45  ;;  %v454_v45 = vsel %vm449_vm2, %v437_v62, %v1665_v12 }
  0xa1   :  { %v371_v50 = vpop.permute.xlu0 %370 }
  0xa2   :  { %v1695_v52 = vpop.permute.xlu1 %384  ;;  %v451_v35 = vsel %vm449_vm2, %v434_v9, %v371_v50 }
  0xa5   :  { %v277_v3 = vpop.permute.xlu0 %276 }
  0xa6   :  { %v1697_v53 = vpop.permute.xlu1 %290  ;;  %v418_v38 = vsel %vm62_vm0, %v1514_v42, %v277_v3 }
  0xa9   :  { %v325_v54 = vpop.permute.xlu0 %324 }
  0xaa   :  { %v1699_v56 = vpop.permute.xlu1 %338  ;;  %v435_v0 = vsel %vm432_vm1, %v418_v38, %v325_v54 }
  0xad   :  { %v373_v57 = vpop.permute.xlu0 %372 }
  0xae   :  { %v1701_v61 = vpop.permute.xlu1 %386  ;;  %v452_v7 = vsel %vm449_vm2, %v435_v0, %v373_v57  ;;  %v423_v57 = vsel %vm62_vm0, %v1410_v27, %v1685_v15  ;;  %v424_v27 = vsel %vm62_vm0, %v1479_v37, %v1691_v46  ;;  %v425_v37 = vsel %vm62_vm0, %v1522_v43, %v1697_v53 }
  0xb1   :  { %v1707_v1 = vpop.permute.xlu0 %292 }
  0xb2   :  { %v1711_v28 = vpop.permute.xlu1 %340 }
  0xb5   :  { %v1720_v63 = vpop.permute.xlu0 %388 }
  0xb6   :  { %v1731_v2 = vpop.permute.xlu1 %294 }
  0xb9   :  { %v343_v11 = vpop.permute.xlu0 %342 }
  0xba   :  { %v391_v54 = vpop.permute.xlu1 %390 }
  0xbd   :  { %v297_v19 = vpop.permute.xlu0 %296 }
  0xca   :  { %v1063_v23 = vpop.f32.mrf.mxu0 }
  0xcc   :  { %v177_v32 = vpop.f32.mrf.mxu0 }
  0xcd   :  { %v466_v60 = vmul.f32 %v450_v30, %v177_v32  ;;  %v484_v30 = vsel %vm62_vm0, %v1274_v8, %v277_v3  ;;  %v467_v32 = vmul.f32 %v1063_v23, %v451_v35  ;;  %v487_v3 = vsel %vm62_vm0, %v1312_v13, %v1667_v16  ;;  %v345_v23 = vpop.permute.xlu1 %344 }
  0xce   :  { %v1066_v36 = vpop.f32.mrf.mxu0  ;;  %v488_v13 = vsel %vm62_vm0, %v1319_v14, %v1673_v6  ;;  %v489_v14 = vsel %vm62_vm0, %v1340_v17, %v1685_v15  ;;  %v490_v17 = vsel %vm62_vm0, %v1347_v18, %v1691_v46  ;;  %v491_v18 = vsel %vm62_vm0, %v1363_v20, %v1697_v53 }
  0xcf   :  { %v469_v42 = vmul.f32 %v1066_v36, %v453_v39  ;;  %642 = vmatmul.mubr.f32.vlgmr.msra.gmra.mxu0 %v466_v60  ;;  %v492_v20 = vsel %vm62_vm0, %v1375_v22, %v1707_v1 }
  0xd0   :  { %v187_v29 = vpop.f32.mrf.mxu0  ;;  %983 = vmatprep.mubr.msk.f32.mxu0 %vm432_vm1, %v483_v47 }
  0xd1   :  { %657 = vmatmul.mubr.f32.vlgmr.msra.gmra.mxu1 %v469_v42  ;;  %v468_v8 = vmul.f32 %v452_v7, %v187_v29  ;;  %v439_v29 = vsel %vm432_vm1, %v422_v5, %v1678_v33  ;;  %v299_v15 = vpop.permute.xlu1 %298 }
  0xd2   :  { %v1069_v41 = vpop.f32.mrf.mxu0  ;;  %986 = vmatprep.mubr.msk.f32.mxu1 %vm432_vm1, %v486_v10  ;;  %v456_v16 = vsel %vm449_vm2, %v439_v29, %v1680_v34  ;;  %v393_v34 = vpop.permute.xlu0 %392 }
  0xd3   :  { %647 = vmatmul.mubr.f32.gmra.mxu0 %v467_v32  ;;  %v471_v12 = vmul.f32 %v1069_v41, %v1676_v31  ;;  %v440_v31 = vsel %vm432_vm1, %v423_v57, %v1687_v40  ;;  %v441_v40 = vsel %vm432_vm1, %v424_v27, %v1693_v49  ;;  %v442_v49 = vsel %vm432_vm1, %v425_v37, %v1699_v56  ;;  %v1960_v57 = vld [vmem:[#allocation3_spill] sm:$0xff] }
  0xd4   :  { %v197_v60 = vpop.f32.mrf.mxu0  ;;  %984 = vmatprep.mubr.msk.f32.mxu0 %vm432_vm1, %v484_v30  ;;  %v457_v6 = vsel %vm449_vm2, %v440_v31, %v1689_v44  ;;  %v426_v44 = vsel %vm62_vm0, %v1560_v48, %v1707_v1  ;;  %v458_v35 = vsel %vm449_vm2, %v441_v40, %v1695_v52  ;;  %v459_v48 = vsel %vm449_vm2, %v442_v49, %v1701_v61 }
  0xd5   :  { %v470_v4 = vmul.f32 %v454_v45, %v197_v60  ;;  %v443_v46 = vsel %vm432_vm1, %v426_v44, %v1711_v28  ;;  %v427_v52 = vsel %vm62_vm0, %v1578_v51, %v1731_v2  ;;  %v395_v47 = vpop.permute.xlu1 %394  ;;  %v428_v61 = vsel %vm62_vm0, %v1605_v55, %v297_v19 }
  0xd6   :  { %v1072_v50 = vpop.f32.mrf.mxu0  ;;  %v347_v39 = vpop.permute.xlu0 %346  ;;  %v460_v42 = vsel %vm449_vm2, %v443_v46, %v1720_v63  ;;  %v444_v53 = vsel %vm432_vm1, %v427_v52, %v343_v11  ;;  %v493_v63 = vsel %vm62_vm0, %v1391_v24, %v1731_v2  ;;  %v445_v32 = vsel %vm432_vm1, %v428_v61, %v345_v23 }
  0xd7   :  { %652 = vmatmul.mubr.f32.gmra.mxu0 %v468_v8  ;;  %662 = vmatmul.mubr.f32.gmra.mxu1 %v470_v4  ;;  %v473_v38 = vmul.f32 %v1072_v50, %v457_v6  ;;  %v461_v10 = vsel %vm449_vm2, %v444_v53, %v391_v54  ;;  %v429_v1 = vsel %vm62_vm0, %v1624_v58, %v299_v15  ;;  %v1958_v4 = vld [vmem:[#allocation2_spill] sm:$0xff] }
  0xd8   :  { %987 = vmatprep.mubr.msk.f32.mxu1 %vm432_vm1, %v487_v3  ;;  %v207_v21 = vpop.f32.mrf.mxu0  ;;  %v462_v7 = vsel %vm449_vm2, %v445_v32, %v393_v34  ;;  %v494_v60 = vsel %vm62_vm0, %v1398_v25, %v297_v19  ;;  %v446_v45 = vsel %vm432_vm1, %v429_v1, %v347_v39  ;;  %v495_v5 = vsel %vm62_vm0, %v1958_v4, %v299_v15  ;;  %v1959_v25 = vld [vmem:[#allocation5_spill] sm:$0xff] }
  0xd9   :  { %v472_v33 = vmul.f32 %v456_v16, %v207_v21  ;;  %v349_v22 = vpop.permute.xlu1 %348  ;;  %v463_v11 = vsel %vm449_vm2, %v446_v45, %v395_v47 }
  0xda   :  { %v1075_v9 = vpop.f32.mrf.mxu0  ;;  %v301_v51 = vpop.permute.xlu0 %300 }
  0xdb   :  { %667 = vmatmul.mubr.f32.gmra.mxu1 %v471_v12  ;;  %v475_v56 = vmul.f32 %v1075_v9, %v459_v48  ;;  %v430_v24 = vsel %vm62_vm0, %v1640_v59, %v301_v51  ;;  %v496_v21 = vsel %vm62_vm0, %v1960_v57, %v301_v51  ;;  %v738_v9 = vld [vmem:[%s1946_s5] sm:$0xf] }
  0xdc   :  { %988 = vmatprep.mubr.msk.f32.mxu1 %vm432_vm1, %v488_v13  ;;  %v217_v26 = vpop.f32.mrf.mxu0  ;;  %v447_v50 = vsel %vm432_vm1, %v430_v24, %v349_v22  ;;  %1085 = vmatprep.subr.msk.mxu0 %vm795_vm3, %v738_v9 }
  0xdd   :  { %v474_v43 = vmul.f32 %v458_v35, %v217_v26  ;;  %v303_v58 = vpop.permute.xlu1 %302  ;;  %1086 = vmatpush3.msk.msra.mxu0 %vm795_vm3, %v738_v9 }
  0xde   :  { %v1078_v36 = vpop.f32.mrf.mxu0  ;;  %v397_v41 = vpop.permute.xlu0 %396  ;;  %v431_v3 = vsel %vm62_vm0, %v1959_v25, %v303_v58 }
  0xdf   :  { %672 = vmatmul.mubr.f32.gmra.mxu1 %v472_v33  ;;  %v477_v55 = vmul.f32 %v1078_v36, %v461_v10  ;;  %v464_v29 = vsel %vm449_vm2, %v447_v50, %v397_v41  ;;  %v1961_v33 = vld [vmem:[#allocation4_spill] sm:$0xff] }
  0xe0   :  { %989 = vmatprep.mubr.msk.f32.mxu1 %vm432_vm1, %v489_v14  ;;  %v227_v0 = vpop.f32.mrf.mxu0  ;;  %v497_v23 = vsel %vm62_vm0, %v1961_v33, %v303_v58  ;;  %v1841_v14 = vld [vmem:[%s1947_s4] ss:$0 sm:$0xff] }
  0xe1   :  { %v476_v28 = vmul.f32 %v460_v42, %v227_v0  ;;  %v399_v13 = vpop.permute.xlu1 %398 }
  0xe2   :  { %v1081_v30 = vpop.f32.mrf.mxu0  ;;  %v351_v54 = vpop.permute.xlu0 %350 }
  0xe3   :  { %677 = vmatmul.mubr.f32.gmra.mxu1 %v473_v38  ;;  %v479_v59 = vmul.f32 %v1081_v30, %v463_v11  ;;  %v448_v19 = vsel %vm432_vm1, %v431_v3, %v351_v54 }
  0xe4   :  { %990 = vmatprep.mubr.msk.f32.mxu1 %vm432_vm1, %v490_v17  ;;  %v237_v62 = vpop.f32.mrf.mxu0  ;;  %v465_v31 = vsel %vm449_vm2, %v448_v19, %v399_v13 }
  0xe5   :  { %v478_v2 = vmul.f32 %v462_v7, %v237_v62 }
  0xe6   :  { %v1084_v8 = vpop.f32.mrf.mxu0 }
  0xe7   :  { %682 = vmatmul.mubr.f32.gmra.mxu1 %v474_v43  ;;  %v481_v27 = vmul.f32 %v1084_v8, %v465_v31 }
  0xe8   :  { %991 = vmatprep.mubr.msk.f32.mxu1 %vm432_vm1, %v491_v18  ;;  %v247_v12 = vpop.f32.mrf.mxu0 }
  0xe9   :  { %v480_v16 = vmul.f32 %v464_v29, %v247_v12 }
  0xeb   :  { %687 = vmatmul.mubr.f32.gmra.mxu1 %v475_v56 }
  0xec   :  { %992 = vmatprep.mubr.msk.f32.mxu1 %vm432_vm1, %v492_v20 }
  0xef   :  { %692 = vmatmul.mubr.f32.gmra.mxu1 %v476_v28 }
  0xf0   :  { %993 = vmatprep.mubr.msk.f32.mxu1 %vm432_vm1, %v493_v63 }
  0xf3   :  { %697 = vmatmul.mubr.f32.gmra.mxu1 %v477_v55 }
  0xf4   :  { %994 = vmatprep.mubr.msk.f32.mxu1 %vm432_vm1, %v494_v60 }
  0xf7   :  { %702 = vmatmul.mubr.f32.gmra.mxu1 %v478_v2 }
  0xf8   :  { %995 = vmatprep.mubr.msk.f32.mxu1 %vm432_vm1, %v495_v5 }
  0xfb   :  { %707 = vmatmul.mubr.f32.gmra.mxu1 %v479_v59 }
  0xfc   :  { %996 = vmatprep.mubr.msk.f32.mxu1 %vm432_vm1, %v496_v21 }
  0xff   :  { %712 = vmatmul.mubr.f32.gmra.mxu1 %v480_v16 }
 0x100   :  { %997 = vmatprep.mubr.msk.f32.mxu1 %vm432_vm1, %v497_v23 }
 0x103   :  { %717 = vmatmul.mubr.f32.gmra.mxu1 %v481_v27 }
 0x18f   :  { %v643_v6 = vpop.f32.mrf.mxu0 }
 0x190   :  { %v644_v34 = vadd.f32 %v1841_v14, %v643_v6 }
 0x191   :  { %v645_v40 = vpop.f32.mrf.mxu0  ;;  %v658_v38 = vpop.f32.mrf.mxu1 }
 0x192   :  { %1163 = vtanh.f32 %v644_v34  ;;  %v659_v44 = vadd.f32 %v1841_v14, %v658_v38 }
 0x193   :  { %v648_v37 = vpop.f32.mrf.mxu0  ;;  %v660_v26 = vpop.f32.mrf.mxu1 }
 0x194   :  { %v649_v17 = vadd.f32 %v1841_v14, %v648_v37 }
 0x195   :  { %v650_v15 = vpop.f32.mrf.mxu0 }
 0x196   :  { %1165 = vtanh.f32 %v649_v17 }
 0x197   :  { %v653_v35 = vpop.f32.mrf.mxu0  ;;  %v663_v49 = vpop.f32.mrf.mxu1 }
 0x198   :  { %v654_v43 = vadd.f32 %v1841_v14, %v653_v35  ;;  %v664_v36 = vadd.f32 %v1841_v14, %v663_v49 }
 0x199   :  { %v655_v39 = vpop.f32.mrf.mxu0  ;;  %v665_v18 = vpop.f32.mrf.mxu1 }
 0x19a   :  { %1167 = vtanh.f32 %v654_v43 }
 0x19b   :  { %1169 = vtanh.f32 %v659_v44  ;;  %v668_v46 = vpop.f32.mrf.mxu1 }
 0x19c   :  { %1171 = vtanh.f32 %v664_v36  ;;  %v669_v48 = vadd.f32 %v1841_v14, %v668_v46 }
 0x19d   :  { %v670_v52 = vpop.f32.mrf.mxu1 }
 0x19e   :  { %1173 = vtanh.f32 %v669_v48 }
 0x19f   :  { %v1164_v56 = vpop.eup %1163  ;;  %v673_v47 = vpop.f32.mrf.mxu1 }
 0x1a0   :  { %v674_v0 = vadd.f32 %v1841_v14, %v673_v47  ;;  %1087 = vmatprep.mubr.msk.f32.mxu0 %vm746_vm4, %v1164_v56 }
 0x1a1   :  { %v675_v42 = vpop.f32.mrf.mxu1 }
 0x1a2   :  { %1175 = vtanh.f32 %v674_v0 }
 0x1a3   :  { %v1166_v20 = vpop.eup %1165  ;;  %v678_v53 = vpop.f32.mrf.mxu1 }
 0x1a4   :  { %v679_v61 = vadd.f32 %v1841_v14, %v678_v53  ;;  %1088 = vmatmul.mubr.msk.f32.vlgmr.msra.gmra.mxu0 %vm746_vm4, %v1166_v20 }
 0x1a5   :  { %v680_v51 = vpop.f32.mrf.mxu1 }
 0x1a6   :  { %1177 = vtanh.f32 %v679_v61 }
 0x1a7   :  { %v1168_v28 = vpop.eup %1167  ;;  %v683_v10 = vpop.f32.mrf.mxu1 }
 0x1a8   :  { %v1170_v30 = vpop.eup %1169  ;;  %v684_v63 = vadd.f32 %v1841_v14, %v683_v10  ;;  %1090 = vmatprep.mubr.msk.f32.mxu0 %vm746_vm4, %v1168_v28 }
 0x1a9   :  { %v1172_v32 = vpop.eup %1171  ;;  %v685_v22 = vpop.f32.mrf.mxu1  ;;  %1091 = vmatmul.mubr.msk.f32.gmra.mxu0 %vm746_vm4, %v1170_v30 }
 0x1aa   :  { %1179 = vtanh.f32 %v684_v63  ;;  %1093 = vmatprep.mubr.msk.f32.mxu0 %vm746_vm4, %v1172_v32 }
 0x1ab   :  { %v1174_v1 = vpop.eup %1173  ;;  %v688_v55 = vpop.f32.mrf.mxu1 }
 0x1ac   :  { %v689_v62 = vadd.f32 %v1841_v14, %v688_v55 }
 0x1ad   :  { %v690_v7 = vpop.f32.mrf.mxu1  ;;  %1094 = vmatmul.mubr.msk.f32.gmra.mxu0 %vm746_vm4, %v1174_v1 }
 0x1ae   :  { %1181 = vtanh.f32 %v689_v62 }
 0x1af   :  { %v1176_v41 = vpop.eup %1175  ;;  %v693_v60 = vpop.f32.mrf.mxu1 }
 0x1b0   :  { %v694_v45 = vadd.f32 %v1841_v14, %v693_v60  ;;  %1096 = vmatprep.mubr.msk.f32.mxu0 %vm746_vm4, %v1176_v41 }
 0x1b1   :  { %v695_v24 = vpop.f32.mrf.mxu1 }
 0x1b2   :  { %1183 = vtanh.f32 %v694_v45 }
 0x1b3   :  { %v1178_v2 = vpop.eup %1177  ;;  %v698_v58 = vpop.f32.mrf.mxu1 }
 0x1b4   :  { %v699_v11 = vadd.f32 %v1841_v14, %v698_v58  ;;  %1097 = vmatmul.mubr.msk.f32.gmra.mxu0 %vm746_vm4, %v1178_v2 }
 0x1b5   :  { %v700_v8 = vpop.f32.mrf.mxu1 }
 0x1b6   :  { %1185 = vtanh.f32 %v699_v11 }
 0x1b7   :  { %v1180_v4 = vpop.eup %1179  ;;  %v703_v5 = vpop.f32.mrf.mxu1 }
 0x1b8   :  { %v704_v50 = vadd.f32 %v1841_v14, %v703_v5  ;;  %1099 = vmatprep.mubr.msk.f32.mxu0 %vm746_vm4, %v1180_v4 }
 0x1b9   :  { %v705_v25 = vpop.f32.mrf.mxu1 }
 0x1ba   :  { %1187 = vtanh.f32 %v704_v50 }
 0x1bb   :  { %v1182_v3 = vpop.eup %1181  ;;  %v708_v54 = vpop.f32.mrf.mxu1 }
 0x1bc   :  { %v709_v59 = vadd.f32 %v1841_v14, %v708_v54  ;;  %1100 = vmatmul.mubr.msk.f32.gmra.mxu0 %vm746_vm4, %v1182_v3 }
 0x1bd   :  { %v710_v12 = vpop.f32.mrf.mxu1 }
 0x1be   :  { %1189 = vtanh.f32 %v709_v59 }
 0x1bf   :  { %v1184_v29 = vpop.eup %1183  ;;  %v713_v57 = vpop.f32.mrf.mxu1 }
 0x1c0   :  { %v714_v21 = vadd.f32 %v1841_v14, %v713_v57  ;;  %1102 = vmatprep.mubr.msk.f32.mxu0 %vm746_vm4, %v1184_v29 }
 0x1c1   :  { %v715_v19 = vpop.f32.mrf.mxu1 }
 0x1c2   :  { %1191 = vtanh.f32 %v714_v21 }
 0x1c3   :  { %v1186_v13 = vpop.eup %1185  ;;  %v718_v16 = vpop.f32.mrf.mxu1 }
 0x1c4   :  { %v719_v31 = vadd.f32 %v1841_v14, %v718_v16  ;;  %1103 = vmatmul.mubr.msk.f32.gmra.mxu0 %vm746_vm4, %v1186_v13  ;;  %v998_v14 = vld [vmem:[%s1948_s6] ss:$0 sm:$0xff] }
 0x1c5   :  { %v720_v33 = vpop.f32.mrf.mxu1 }
 0x1c6   :  { %1193 = vtanh.f32 %v719_v31 }
 0x1c7   :  { %v1188_v23 = vpop.eup %1187 }
 0x1c8   :  { %1105 = vmatprep.mubr.msk.f32.mxu0 %vm746_vm4, %v1188_v23 }
 0x1cb   :  { %v1190_v27 = vpop.eup %1189 }
 0x1cc   :  { %1106 = vmatmul.mubr.msk.f32.gmra.mxu0 %vm746_vm4, %v1190_v27 }
 0x1cf   :  { %v1192_v9 = vpop.eup %1191 }
 0x1d0   :  { %1108 = vmatprep.mubr.msk.f32.mxu0 %vm746_vm4, %v1192_v9 }
 0x1d3   :  { %v1194_v6 = vpop.eup %1193 }
 0x1d4   :  { %1109 = vmatmul.mubr.msk.f32.gmra.mxu0 %vm746_vm4, %v1194_v6 }
 0x264   :  { %v1089_v34 = vpop.f32.mrf.mxu0 }
 0x265   :  { %v871_v40 = vadd.f32 %v1089_v34, %v998_v14 }
 0x266   :  { %v865_v38 = vpop.f32.mrf.mxu0 }
 0x267   :  { %946 = vst.msk [vmem:[%s1949_s7 + $0x8] sm:$0xff] %vm944_vm5, %v871_v40  ;;  %v866_v37 = vadd.f32 %v998_v14, %v865_v38 }
 0x269   :  { %945 = vst.msk [vmem:[%s1949_s7] sm:$0xff] %vm944_vm5, %v866_v37  ;;  %v1092_v26 = vpop.f32.mrf.mxu0 }
 0x26a   :  { %v881_v17 = vadd.f32 %v1092_v26, %v998_v14 }
 0x26b   :  { %v875_v15 = vpop.f32.mrf.mxu0 }
 0x26c   :  { %948 = vst.msk [vmem:[%s1949_s7 + $0x18] sm:$0xff] %vm944_vm5, %v881_v17  ;;  %v876_v44 = vadd.f32 %v998_v14, %v875_v15 }
 0x26d   :  { %v1095_v35 = vpop.f32.mrf.mxu0 }
 0x26e   :  { %947 = vst.msk [vmem:[%s1949_s7 + $0x10] sm:$0xff] %vm944_vm5, %v876_v44  ;;  %v891_v49 = vadd.f32 %v1095_v35, %v998_v14 }
 0x26f   :  { %v885_v43 = vpop.f32.mrf.mxu0 }
 0x270   :  { %950 = vst.msk [vmem:[%s1949_s7 + $0x28] sm:$0xff] %vm944_vm5, %v891_v49  ;;  %v886_v36 = vadd.f32 %v998_v14, %v885_v43 }
 0x272   :  { %949 = vst.msk [vmem:[%s1949_s7 + $0x20] sm:$0xff] %vm944_vm5, %v886_v36 }
 0x274   :  { %v1098_v39 = vpop.f32.mrf.mxu0 }
 0x275   :  { %v901_v18 = vadd.f32 %v1098_v39, %v998_v14 }
 0x276   :  { %v895_v46 = vpop.f32.mrf.mxu0 }
 0x277   :  { %952 = vst.msk [vmem:[%s1949_s7 + $0x38] sm:$0xff] %vm944_vm5, %v901_v18  ;;  %v896_v48 = vadd.f32 %v998_v14, %v895_v46 }
 0x279   :  { %951 = vst.msk [vmem:[%s1949_s7 + $0x30] sm:$0xff] %vm944_vm5, %v896_v48 }
 0x27c   :  { %v1101_v52 = vpop.f32.mrf.mxu0 }
 0x27d   :  { %v911_v56 = vadd.f32 %v1101_v52, %v998_v14 }
 0x27e   :  { %v905_v47 = vpop.f32.mrf.mxu0 }
 0x27f   :  { %954 = vst.msk [vmem:[%s1949_s7 + $0x48] sm:$0xff] %vm944_vm5, %v911_v56  ;;  %v906_v0 = vadd.f32 %v998_v14, %v905_v47 }
 0x281   :  { %953 = vst.msk [vmem:[%s1949_s7 + $0x40] sm:$0xff] %vm944_vm5, %v906_v0 }
 0x284   :  { %v1104_v42 = vpop.f32.mrf.mxu0 }
 0x285   :  { %v921_v20 = vadd.f32 %v1104_v42, %v998_v14 }
 0x286   :  { %v915_v53 = vpop.f32.mrf.mxu0 }
 0x287   :  { %956 = vst.msk [vmem:[%s1949_s7 + $0x58] sm:$0xff] %vm944_vm5, %v921_v20  ;;  %v916_v61 = vadd.f32 %v998_v14, %v915_v53 }
 0x289   :  { %955 = vst.msk [vmem:[%s1949_s7 + $0x50] sm:$0xff] %vm944_vm5, %v916_v61 }
 0x28c   :  { %v1107_v51 = vpop.f32.mrf.mxu0 }
 0x28d   :  { %v931_v28 = vadd.f32 %v1107_v51, %v998_v14 }
 0x28e   :  { %v925_v10 = vpop.f32.mrf.mxu0 }
 0x28f   :  { %958 = vst.msk [vmem:[%s1949_s7 + $0x68] sm:$0xff] %vm944_vm5, %v931_v28  ;;  %v926_v30 = vadd.f32 %v998_v14, %v925_v10 }
 0x291   :  { %957 = vst.msk [vmem:[%s1949_s7 + $0x60] sm:$0xff] %vm944_vm5, %v926_v30 }
 0x294   :  { %v1110_v63 = vpop.f32.mrf.mxu0 }
 0x295   :  { %v941_v32 = vadd.f32 %v1110_v63, %v998_v14 }
 0x296   :  { %v935_v22 = vpop.f32.mrf.mxu0 }
 0x297   :  { %960 = vst.msk [vmem:[%s1949_s7 + $0x78] sm:$0xff] %vm944_vm5, %v941_v32  ;;  %v936_v1 = vadd.f32 %v998_v14, %v935_v22 }
 0x299   :  { %959 = vst.msk [vmem:[%s1949_s7 + $0x70] sm:$0xff] %vm944_vm5, %v936_v1 }

</bundles_post_ra>
